<compile_context>
chip_gen: v6e
topology: v6e:2x2x1
jax: 0.10.0
libtpu: 0.0.40
codegen_flags: <defaults>
</compile_context>

<pallas_src>
import functools
import math

import jax
import jax.numpy as jnp
from jax.experimental import pallas as pl
from jax.experimental.pallas import tpu as pltpu


# ---------------------------------------------------------------------------
# In-kernel helpers (pure jnp, traced inside the Pallas body, f32 math)
# ---------------------------------------------------------------------------
def _layernorm(x, gamma, beta, eps=1e-5):
    mean = jnp.mean(x, axis=-1, keepdims=True)
    var = jnp.mean((x - mean) ** 2, axis=-1, keepdims=True)
    return (x - mean) * jax.lax.rsqrt(var + eps) * gamma + beta


def _gelu_tanh(x):
    # TODO(synk): reference nn.GELU default is exact erf; tanh approximation
    # used here (common ViT GELU definition; erf has no Mosaic lowering).
    c = math.sqrt(2.0 / math.pi)
    return 0.5 * x * (1.0 + jnp.tanh(c * (x + 0.044715 * x * x * x)))


# ---------------------------------------------------------------------------
# Fused kernel: one grid step = (one batch item, one transformer layer).
# Residual stream is kept in f32 in the resident output block across depth.
# ---------------------------------------------------------------------------
def block_kernel(x_ref,
                 ln1g_ref, ln1b_ref, wqkv_ref, wo_ref, bo_ref,
                 ln2g_ref, ln2b_ref, w1_ref, b1_ref, w2_ref, b2_ref,
                 o_ref, oc_ref, *, heads):
    layer = pl.program_id(1)
    bf16 = jnp.bfloat16

    @pl.when(layer == 0)
    def _():
        o_ref[...] = x_ref[...].astype(o_ref.dtype)

    x = o_ref[...].astype(jnp.float32)                       # (N, C) residual
    N, C = x.shape
    hd = C // heads

    # ---- Residual(PreNormDrop(SelfAttention)); dropout = identity --------
    xn = _layernorm(x, ln1g_ref[...], ln1b_ref[...]).astype(bf16)   # (N, C)
    # fused QKV projection: full-width contraction/output, scale folded in Wq
    qkv = jnp.dot(xn, wqkv_ref[...], preferred_element_type=jnp.float32)  # (N, 3C)
    q = qkv[:, :C]
    k = qkv[:, C:2 * C]
    v = qkv[:, 2 * C:]

    for h in range(heads):                                   # static, small
        q_h = q[:, h * hd:(h + 1) * hd].astype(bf16)
        k_h = k[:, h * hd:(h + 1) * hd].astype(bf16)
        v_h = v[:, h * hd:(h + 1) * hd].astype(bf16)
        # scores in NT form: contract last dims, no explicit transpose
        s = jax.lax.dot_general(q_h, k_h, (((1,), (1,)), ((), ())),
                                preferred_element_type=jnp.float32)   # (N, N)
        s = s - jnp.max(s, axis=-1, keepdims=True)
        p = jnp.exp(s)                                       # unnormalized
        o_h = jnp.dot(p.astype(bf16), v_h,
                      preferred_element_type=jnp.float32)    # (N, hd)
        # normalize after the PV matmul: O(N*hd) instead of O(N^2)
        o_h = o_h * pl.reciprocal(jnp.sum(p, axis=-1, keepdims=True),
                                  approx=True)
        # head-combine: write into the (N, C) buffer at lane offset h*hd
        oc_ref[:, h * hd:(h + 1) * hd] = o_h.astype(bf16)

    # single fused output projection over all heads
    attn = jnp.dot(oc_ref[...], wo_ref[...],
                   preferred_element_type=jnp.float32)        # (N, C)
    x = x + attn + bo_ref[...]                                # residual 1

    # ---- Residual(PreNorm(FeedForward)); dropout = identity --------------
    xn2 = _layernorm(x, ln2g_ref[...], ln2b_ref[...]).astype(bf16)
    h1 = jnp.dot(xn2, w1_ref[...], preferred_element_type=jnp.float32) + b1_ref[...]
    h1 = _gelu_tanh(h1)
    h2 = jnp.dot(h1.astype(bf16), w2_ref[...],
                 preferred_element_type=jnp.float32) + b2_ref[...]
    o_ref[...] = (x + h2).astype(o_ref.dtype)                 # residual 2


# ---------------------------------------------------------------------------
# Wrapper: single pallas_call for the whole depth-stack.
#   grid = (batch, depth); batch is "parallel" (megacore shards it on v7x),
#   depth is "arbitrary" (weights for layer l+1 prefetch during layer l).
# ---------------------------------------------------------------------------
def transformer_forward(x, params, *, heads,
                        vmem_limit_bytes=None, weight_buffer_count=None):
    B, N, C = x.shape
    depth = params["wqkv"].shape[0]

    matmul_keys = ("wqkv", "wo", "w1", "w2")
    order = ("ln1_g", "ln1_b", "wqkv", "wo", "bo",
             "ln2_g", "ln2_b", "w1", "b1", "w2", "b2")
    ops = []
    for kname in order:
        a = params[kname]
        if kname in matmul_keys:        # bf16 weights: native MXU, half the DMA
            a = a.astype(jnp.bfloat16)
        ops.append((kname, a))

    def w_spec(kname, arr):
        nd = arr.ndim - 1
        kwargs = {}
        if weight_buffer_count is not None and kname in matmul_keys:
            # deeper weight buffering (useful on DMA-bound v5e)
            kwargs["pipeline_mode"] = pl.Buffered(weight_buffer_count)
        return pl.BlockSpec((None,) + arr.shape[1:],
                            lambda i, l, _nd=nd: (l,) + (0,) * _nd,
                            **kwargs)

    kern = functools.partial(block_kernel, heads=heads)

    cp_kwargs = dict(dimension_semantics=("parallel", "arbitrary"))
    if vmem_limit_bytes is not None:
        # For v7x (64 MiB VMEM) budget explicitly: ~2x bf16 layer weights for
        # double buffering + residual block + FFN intermediate + score tiles.
        cp_kwargs["vmem_limit_bytes"] = vmem_limit_bytes

    return pl.pallas_call(
        kern,
        out_shape=jax.ShapeDtypeStruct((B, N, C), x.dtype),
        grid_spec=pltpu.PrefetchScalarGridSpec(
            num_scalar_prefetch=0,
            grid=(B, depth),
            in_specs=[pl.BlockSpec((None, N, C), lambda i, l: (i, 0, 0))]
                     + [w_spec(k, a) for k, a in ops],
            out_specs=pl.BlockSpec((None, N, C), lambda i, l: (i, 0, 0)),
            # bf16 head-combine buffer (the only scratch; residual lives in o_ref)
            scratch_shapes=[pltpu.VMEM((N, C), jnp.bfloat16)],
        ),
        compiler_params=pltpu.CompilerParams(**cp_kwargs),
    )(x, *[a for _, a in ops])


# ---------------------------------------------------------------------------
# Deterministic parameter construction (xavier_uniform weights, zero biases,
# LayerNorm gamma=1 / beta=0).  Weights are stacked over depth, pre-transposed
# to (in, out).  Wqkv columns are [Q | K | V], each head-major; the attention
# scale hd**-0.5 is folded into the Q columns.
# ---------------------------------------------------------------------------
def init_params(key, depth, dim, heads, mlp_dim):
    hd = dim // heads
    scale = hd ** -0.5

    def xavier(k, fan_in, fan_out):
        bound = math.sqrt(6.0 / (fan_in + fan_out))
        return jax.random.uniform(k, (fan_in, fan_out), jnp.float32, -bound, bound)

    keys = jax.random.split(key, depth * 4)
    wqkv, wo, w1l, w2l = [], [], [], []
    for d in range(depth):
        k_qkv, k_proj, k_w1, k_w2 = keys[4 * d: 4 * d + 4]
        full = xavier(k_qkv, dim, 3 * dim)                 # (dim, 3*dim)
        full = full.at[:, :dim].multiply(scale)            # fold scale into Wq
        wqkv.append(full)
        wo.append(xavier(k_proj, dim, dim))                # (dim, dim), head-major rows
        w1l.append(xavier(k_w1, dim, mlp_dim))
        w2l.append(xavier(k_w2, mlp_dim, dim))

    stack = lambda lst: jnp.stack(lst, axis=0)
    return dict(
        ln1_g=jnp.ones((depth, 1, dim), jnp.float32),
        ln1_b=jnp.zeros((depth, 1, dim), jnp.float32),
        wqkv=stack(wqkv),
        wo=stack(wo), bo=jnp.zeros((depth, 1, dim), jnp.float32),
        ln2_g=jnp.ones((depth, 1, dim), jnp.float32),
        ln2_b=jnp.zeros((depth, 1, dim), jnp.float32),
        w1=stack(w1l), b1=jnp.zeros((depth, 1, mlp_dim), jnp.float32),
        w2=stack(w2l), b2=jnp.zeros((depth, 1, dim), jnp.float32),
    )


# ---------------------------------------------------------------------------
# Pure-JAX f32 reference (same math, same weight layout) for a sanity check.
# ---------------------------------------------------------------------------
def reference_forward(x, params, *, heads):
    depth = params["wqkv"].shape[0]
    B, N, C = x.shape
    hd = C // heads

    def ln(v, g, b):
        m = jnp.mean(v, -1, keepdims=True)
        var = jnp.mean((v - m) ** 2, -1, keepdims=True)
        return (v - m) * jax.lax.rsqrt(var + 1e-5) * g + b

    def split_heads(t):
        return t.reshape(B, N, heads, hd).transpose(0, 2, 1, 3)

    for d in range(depth):
        xn = ln(x, params["ln1_g"][d], params["ln1_b"][d])
        qkv = jnp.einsum("bnc,cm->bnm", xn, params["wqkv"][d])
        q, k, v = qkv[..., :C], qkv[..., C:2 * C], qkv[..., 2 * C:]
        qh, kh, vh = split_heads(q), split_heads(k), split_heads(v)
        s = jnp.einsum("bhnd,bhmd->bhnm", qh, kh)          # scale already in Wq
        p = jax.nn.softmax(s, axis=-1)
        o = jnp.einsum("bhnm,bhmd->bhnd", p, vh)
        o = o.transpose(0, 2, 1, 3).reshape(B, N, C)        # head-major concat
        attn = jnp.einsum("bnc,cd->bnd", o, params["wo"][d]) + params["bo"][d]
        x = x + attn
        xn2 = ln(x, params["ln2_g"][d], params["ln2_b"][d])
        h1 = _gelu_tanh(jnp.einsum("bnc,cm->bnm", xn2, params["w1"][d])
                        + params["b1"][d])
        x = x + jnp.einsum("bnm,mc->bnc", h1, params["w2"][d]) + params["b2"][d]
    return x


# ---------------------------------------------------------------------------
if __name__ == "__main__":
    # small config consistent with the module: dim=32, depth=2, heads=4, mlp_dim=64
    B, N, DIM, DEPTH, HEADS, MLP_DIM = 2, 8, 32, 2, 4, 64

    key = jax.random.PRNGKey(0)
    key_x, key_p = jax.random.split(key)
    x = jax.random.normal(key_x, (B, N, DIM), jnp.float32)
    params = init_params(key_p, DEPTH, DIM, HEADS, MLP_DIM)

    # TODO(synk): dropout (p=0.1) is a no-op here (eval-mode forward).
    out = transformer_forward(x, params, heads=HEADS)
    jax.block_until_ready(out)

    ref = reference_forward(x, params, heads=HEADS)
    assert out.shape == (B, N, DIM) and out.dtype == jnp.float32
    assert bool(jnp.all(jnp.isfinite(out)))
    # kernel uses bf16 matmuls + approx reciprocal + tanh GELU -> loose tolerance
    assert bool(jnp.allclose(out, ref, atol=0.15, rtol=0.05)), \
        f"max abs err {float(jnp.max(jnp.abs(out - ref)))}"
    print("KERNEL_OK")
</pallas_src>

<mosaic_0001>
module attributes {stable_mosaic.version = 11 : i64} {
  func.func @block_kernel(%arg0: i32, %arg1: i32, %arg2: memref<1x8x32xf32, #tpu.memory_space<vmem>>, %arg3: memref<1x1x32xf32, #tpu.memory_space<vmem>>, %arg4: memref<1x1x32xf32, #tpu.memory_space<vmem>>, %arg5: memref<1x32x96xbf16, #tpu.memory_space<vmem>>, %arg6: memref<1x32x32xbf16, #tpu.memory_space<vmem>>, %arg7: memref<1x1x32xf32, #tpu.memory_space<vmem>>, %arg8: memref<1x1x32xf32, #tpu.memory_space<vmem>>, %arg9: memref<1x1x32xf32, #tpu.memory_space<vmem>>, %arg10: memref<1x32x64xbf16, #tpu.memory_space<vmem>>, %arg11: memref<1x1x64xf32, #tpu.memory_space<vmem>>, %arg12: memref<1x64x32xbf16, #tpu.memory_space<vmem>>, %arg13: memref<1x1x32xf32, #tpu.memory_space<vmem>>, %arg14: memref<1x8x32xf32, #tpu.memory_space<vmem>>, %arg15: memref<8x32xbf16, #tpu.memory_space<vmem>>) attributes {dimension_semantics = [#tpu.dimension_semantics<parallel>, #tpu.dimension_semantics<arbitrary>], iteration_bounds = array<i64: 2, 2>, scalar_prefetch = 0 : i64, scratch_operands = 1 : i64, tpu.core_type = #tpu.core_type<tc>, window_params = [{transform_indices = @transform_0, window_bounds = array<i64: 1, 8, 32>}, {transform_indices = @transform_1, window_bounds = array<i64: 1, 1, 32>}, {transform_indices = @transform_2, window_bounds = array<i64: 1, 1, 32>}, {transform_indices = @transform_3, window_bounds = array<i64: 1, 32, 96>}, {transform_indices = @transform_4, window_bounds = array<i64: 1, 32, 32>}, {transform_indices = @transform_5, window_bounds = array<i64: 1, 1, 32>}, {transform_indices = @transform_6, window_bounds = array<i64: 1, 1, 32>}, {transform_indices = @transform_7, window_bounds = array<i64: 1, 1, 32>}, {transform_indices = @transform_8, window_bounds = array<i64: 1, 32, 64>}, {transform_indices = @transform_9, window_bounds = array<i64: 1, 1, 64>}, {transform_indices = @transform_10, window_bounds = array<i64: 1, 64, 32>}, {transform_indices = @transform_11, window_bounds = array<i64: 1, 1, 32>}, {transform_indices = @transform_12, window_bounds = array<i64: 1, 8, 32>}]} {
    %c0_i32 = arith.constant 0 : i32
    %0 = arith.cmpi eq, %arg1, %c0_i32 : i32
    %1 = arith.extui %0 : i1 to i32
    %c0_i32_0 = arith.constant 0 : i32
    %2 = arith.cmpi ne, %1, %c0_i32_0 : i32
    scf.if %2 {
      %c0_79 = arith.constant 0 : index
      %c0_80 = arith.constant 0 : index
      %c0_81 = arith.constant 0 : index
      %190 = vector.load %arg2[%c0_79, %c0_80, %c0_81] : memref<1x8x32xf32, #tpu.memory_space<vmem>>, vector<1x8x32xf32>
      %191 = vector.shape_cast %190 : vector<1x8x32xf32> to vector<8x32xf32>
      %c0_82 = arith.constant 0 : index
      %c0_83 = arith.constant 0 : index
      %c0_84 = arith.constant 0 : index
      %192 = vector.load %arg14[%c0_82, %c0_83, %c0_84] : memref<1x8x32xf32, #tpu.memory_space<vmem>>, vector<1x8x32xf32>
      %193 = vector.shape_cast %192 : vector<1x8x32xf32> to vector<8x32xf32>
      %194 = vector.shape_cast %191 : vector<8x32xf32> to vector<1x8x32xf32>
      tpu.vector_store %arg14[%c0_82, %c0_83, %c0_84], %194 {strides = array<i32>} : memref<1x8x32xf32, #tpu.memory_space<vmem>>, vector<1x8x32xf32>,
    } else {
    }
    %c0 = arith.constant 0 : index
    %c0_1 = arith.constant 0 : index
    %c0_2 = arith.constant 0 : index
    %3 = vector.load %arg14[%c0, %c0_1, %c0_2] : memref<1x8x32xf32, #tpu.memory_space<vmem>>, vector<1x8x32xf32>
    %4 = vector.shape_cast %3 : vector<1x8x32xf32> to vector<8x32xf32>
    %c0_3 = arith.constant 0 : index
    %c0_4 = arith.constant 0 : index
    %c0_5 = arith.constant 0 : index
    %5 = vector.load %arg3[%c0_3, %c0_4, %c0_5] : memref<1x1x32xf32, #tpu.memory_space<vmem>>, vector<1x1x32xf32>
    %6 = vector.shape_cast %5 : vector<1x1x32xf32> to vector<1x32xf32>
    %c0_6 = arith.constant 0 : index
    %c0_7 = arith.constant 0 : index
    %c0_8 = arith.constant 0 : index
    %7 = vector.load %arg4[%c0_6, %c0_7, %c0_8] : memref<1x1x32xf32, #tpu.memory_space<vmem>>, vector<1x1x32xf32>
    %8 = vector.shape_cast %7 : vector<1x1x32xf32> to vector<1x32xf32>
    %cst = arith.constant dense<0.000000e+00> : vector<8xf32>
    %9 = vector.multi_reduction <add>, %4, %cst [1] : vector<8x32xf32> to vector<8xf32>
    %10 = vector.shape_cast %9 : vector<8xf32> to vector<8x1xf32>
    %cst_9 = arith.constant 3.200000e+01 : f32
    %11 = vector.broadcast %cst_9 : f32 to vector<8x1xf32>
    %12 = arith.divf %10, %11 : vector<8x1xf32>
    %13 = vector.broadcast %12 : vector<8x1xf32> to vector<8x32xf32>
    %14 = arith.subf %4, %13 : vector<8x32xf32>
    %15 = arith.mulf %14, %14 : vector<8x32xf32>
    %cst_10 = arith.constant dense<0.000000e+00> : vector<8xf32>
    %16 = vector.multi_reduction <add>, %15, %cst_10 [1] : vector<8x32xf32> to vector<8xf32>
    %17 = vector.shape_cast %16 : vector<8xf32> to vector<8x1xf32>
    %cst_11 = arith.constant 3.200000e+01 : f32
    %18 = vector.broadcast %cst_11 : f32 to vector<8x1xf32>
    %19 = arith.divf %17, %18 : vector<8x1xf32>
    %20 = vector.broadcast %12 : vector<8x1xf32> to vector<8x32xf32>
    %21 = arith.subf %4, %20 : vector<8x32xf32>
    %cst_12 = arith.constant 9.99999974E-6 : f32
    %22 = vector.broadcast %cst_12 : f32 to vector<8x1xf32>
    %23 = arith.addf %19, %22 : vector<8x1xf32>
    %24 = math.rsqrt %23 : vector<8x1xf32>
    %25 = vector.broadcast %24 : vector<8x1xf32> to vector<8x32xf32>
    %26 = arith.mulf %21, %25 : vector<8x32xf32>
    %27 = vector.broadcast %6 : vector<1x32xf32> to vector<8x32xf32>
    %28 = arith.mulf %26, %27 : vector<8x32xf32>
    %29 = vector.broadcast %8 : vector<1x32xf32> to vector<8x32xf32>
    %30 = arith.addf %28, %29 : vector<8x32xf32>
    %31 = arith.truncf %30 : vector<8x32xf32> to vector<8x32xbf16>
    %c0_13 = arith.constant 0 : index
    %c0_14 = arith.constant 0 : index
    %c0_15 = arith.constant 0 : index
    %32 = vector.load %arg5[%c0_13, %c0_14, %c0_15] : memref<1x32x96xbf16, #tpu.memory_space<vmem>>, vector<1x32x96xbf16>
    %33 = vector.shape_cast %32 : vector<1x32x96xbf16> to vector<32x96xbf16>
    %cst_16 = arith.constant dense<0.000000e+00> : vector<8x96xf32>
    %34 = tpu.matmul %31, %33, %cst_16 {dimension_numbers = #tpu.dot_dimension_numbers<[1], [0], [0], [1], [0, 0, 1, 1], [], []>} : vector<8x32xbf16>, vector<32x96xbf16>, vector<8x96xf32> -> vector<8x96xf32>
    %35 = vector.extract_strided_slice %34 {offsets = [0, 0], sizes = [8, 32], strides = [1, 1]} : vector<8x96xf32> to vector<8x32xf32>
    %36 = vector.extract_strided_slice %34 {offsets = [0, 32], sizes = [8, 32], strides = [1, 1]} : vector<8x96xf32> to vector<8x32xf32>
    %37 = vector.extract_strided_slice %34 {offsets = [0, 64], sizes = [8, 32], strides = [1, 1]} : vector<8x96xf32> to vector<8x32xf32>
    %38 = vector.extract_strided_slice %35 {offsets = [0, 0], sizes = [8, 8], strides = [1, 1]} : vector<8x32xf32> to vector<8x8xf32>
    %39 = arith.truncf %38 : vector<8x8xf32> to vector<8x8xbf16>
    %40 = vector.extract_strided_slice %36 {offsets = [0, 0], sizes = [8, 8], strides = [1, 1]} : vector<8x32xf32> to vector<8x8xf32>
    %41 = arith.truncf %40 : vector<8x8xf32> to vector<8x8xbf16>
    %42 = vector.extract_strided_slice %37 {offsets = [0, 0], sizes = [8, 8], strides = [1, 1]} : vector<8x32xf32> to vector<8x8xf32>
    %43 = arith.truncf %42 : vector<8x8xf32> to vector<8x8xbf16>
    %cst_17 = arith.constant dense<0.000000e+00> : vector<8x8xf32>
    %44 = tpu.matmul %39, %41, %cst_17 {dimension_numbers = #tpu.dot_dimension_numbers<[1], [1], [0], [0], [0, 0, 1, 0], [], []>} : vector<8x8xbf16>, vector<8x8xbf16>, vector<8x8xf32> -> vector<8x8xf32>
    %cst_18 = arith.constant dense<0xFF800000> : vector<8xf32>
    %45 = vector.multi_reduction <maximumf>, %44, %cst_18 [1] : vector<8x8xf32> to vector<8xf32>
    %46 = vector.shape_cast %45 : vector<8xf32> to vector<8x1xf32>
    %47 = vector.broadcast %46 : vector<8x1xf32> to vector<8x8xf32>
    %48 = arith.subf %44, %47 : vector<8x8xf32>
    %49 = math.exp %48 : vector<8x8xf32>
    %50 = arith.truncf %49 : vector<8x8xf32> to vector<8x8xbf16>
    %cst_19 = arith.constant dense<0.000000e+00> : vector<8x8xf32>
    %51 = tpu.matmul %50, %43, %cst_19 {dimension_numbers = #tpu.dot_dimension_numbers<[1], [0], [0], [1], [0, 0, 1, 1], [], []>} : vector<8x8xbf16>, vector<8x8xbf16>, vector<8x8xf32> -> vector<8x8xf32>
    %cst_20 = arith.constant dense<0.000000e+00> : vector<8xf32>
    %52 = vector.multi_reduction <add>, %49, %cst_20 [1] : vector<8x8xf32> to vector<8xf32>
    %53 = vector.shape_cast %52 : vector<8xf32> to vector<8x1xf32>
    %54 = tpu.reciprocal %53 {approx = true} : vector<8x1xf32> -> vector<8x1xf32>
    %55 = vector.broadcast %54 : vector<8x1xf32> to vector<8x8xf32>
    %56 = arith.mulf %51, %55 : vector<8x8xf32>
    %57 = arith.truncf %56 : vector<8x8xf32> to vector<8x8xbf16>
    %c0_21 = arith.constant 0 : index
    %c0_22 = arith.constant 0 : index
    %58 = vector.load %arg15[%c0_21, %c0_22] : memref<8x32xbf16, #tpu.memory_space<vmem>>, vector<8x8xbf16>
    tpu.vector_store %arg15[%c0_21, %c0_22], %57 {strides = array<i32>} : memref<8x32xbf16, #tpu.memory_space<vmem>>, vector<8x8xbf16>,
    %59 = vector.extract_strided_slice %35 {offsets = [0, 8], sizes = [8, 8], strides = [1, 1]} : vector<8x32xf32> to vector<8x8xf32>
    %60 = arith.truncf %59 : vector<8x8xf32> to vector<8x8xbf16>
    %61 = vector.extract_strided_slice %36 {offsets = [0, 8], sizes = [8, 8], strides = [1, 1]} : vector<8x32xf32> to vector<8x8xf32>
    %62 = arith.truncf %61 : vector<8x8xf32> to vector<8x8xbf16>
    %63 = vector.extract_strided_slice %37 {offsets = [0, 8], sizes = [8, 8], strides = [1, 1]} : vector<8x32xf32> to vector<8x8xf32>
    %64 = arith.truncf %63 : vector<8x8xf32> to vector<8x8xbf16>
    %cst_23 = arith.constant dense<0.000000e+00> : vector<8x8xf32>
    %65 = tpu.matmul %60, %62, %cst_23 {dimension_numbers = #tpu.dot_dimension_numbers<[1], [1], [0], [0], [0, 0, 1, 0], [], []>} : vector<8x8xbf16>, vector<8x8xbf16>, vector<8x8xf32> -> vector<8x8xf32>
    %cst_24 = arith.constant dense<0xFF800000> : vector<8xf32>
    %66 = vector.multi_reduction <maximumf>, %65, %cst_24 [1] : vector<8x8xf32> to vector<8xf32>
    %67 = vector.shape_cast %66 : vector<8xf32> to vector<8x1xf32>
    %68 = vector.broadcast %67 : vector<8x1xf32> to vector<8x8xf32>
    %69 = arith.subf %65, %68 : vector<8x8xf32>
    %70 = math.exp %69 : vector<8x8xf32>
    %71 = arith.truncf %70 : vector<8x8xf32> to vector<8x8xbf16>
    %cst_25 = arith.constant dense<0.000000e+00> : vector<8x8xf32>
    %72 = tpu.matmul %71, %64, %cst_25 {dimension_numbers = #tpu.dot_dimension_numbers<[1], [0], [0], [1], [0, 0, 1, 1], [], []>} : vector<8x8xbf16>, vector<8x8xbf16>, vector<8x8xf32> -> vector<8x8xf32>
    %cst_26 = arith.constant dense<0.000000e+00> : vector<8xf32>
    %73 = vector.multi_reduction <add>, %70, %cst_26 [1] : vector<8x8xf32> to vector<8xf32>
    %74 = vector.shape_cast %73 : vector<8xf32> to vector<8x1xf32>
    %75 = tpu.reciprocal %74 {approx = true} : vector<8x1xf32> -> vector<8x1xf32>
    %76 = vector.broadcast %75 : vector<8x1xf32> to vector<8x8xf32>
    %77 = arith.mulf %72, %76 : vector<8x8xf32>
    %78 = arith.truncf %77 : vector<8x8xf32> to vector<8x8xbf16>
    %c0_27 = arith.constant 0 : index
    %c8 = arith.constant 8 : index
    %79 = vector.load %arg15[%c0_27, %c8] : memref<8x32xbf16, #tpu.memory_space<vmem>>, vector<8x8xbf16>
    tpu.vector_store %arg15[%c0_27, %c8], %78 {strides = array<i32>} : memref<8x32xbf16, #tpu.memory_space<vmem>>, vector<8x8xbf16>,
    %80 = vector.extract_strided_slice %35 {offsets = [0, 16], sizes = [8, 8], strides = [1, 1]} : vector<8x32xf32> to vector<8x8xf32>
    %81 = arith.truncf %80 : vector<8x8xf32> to vector<8x8xbf16>
    %82 = vector.extract_strided_slice %36 {offsets = [0, 16], sizes = [8, 8], strides = [1, 1]} : vector<8x32xf32> to vector<8x8xf32>
    %83 = arith.truncf %82 : vector<8x8xf32> to vector<8x8xbf16>
    %84 = vector.extract_strided_slice %37 {offsets = [0, 16], sizes = [8, 8], strides = [1, 1]} : vector<8x32xf32> to vector<8x8xf32>
    %85 = arith.truncf %84 : vector<8x8xf32> to vector<8x8xbf16>
    %cst_28 = arith.constant dense<0.000000e+00> : vector<8x8xf32>
    %86 = tpu.matmul %81, %83, %cst_28 {dimension_numbers = #tpu.dot_dimension_numbers<[1], [1], [0], [0], [0, 0, 1, 0], [], []>} : vector<8x8xbf16>, vector<8x8xbf16>, vector<8x8xf32> -> vector<8x8xf32>
    %cst_29 = arith.constant dense<0xFF800000> : vector<8xf32>
    %87 = vector.multi_reduction <maximumf>, %86, %cst_29 [1] : vector<8x8xf32> to vector<8xf32>
    %88 = vector.shape_cast %87 : vector<8xf32> to vector<8x1xf32>
    %89 = vector.broadcast %88 : vector<8x1xf32> to vector<8x8xf32>
    %90 = arith.subf %86, %89 : vector<8x8xf32>
    %91 = math.exp %90 : vector<8x8xf32>
    %92 = arith.truncf %91 : vector<8x8xf32> to vector<8x8xbf16>
    %cst_30 = arith.constant dense<0.000000e+00> : vector<8x8xf32>
    %93 = tpu.matmul %92, %85, %cst_30 {dimension_numbers = #tpu.dot_dimension_numbers<[1], [0], [0], [1], [0, 0, 1, 1], [], []>} : vector<8x8xbf16>, vector<8x8xbf16>, vector<8x8xf32> -> vector<8x8xf32>
    %cst_31 = arith.constant dense<0.000000e+00> : vector<8xf32>
    %94 = vector.multi_reduction <add>, %91, %cst_31 [1] : vector<8x8xf32> to vector<8xf32>
    %95 = vector.shape_cast %94 : vector<8xf32> to vector<8x1xf32>
    %96 = tpu.reciprocal %95 {approx = true} : vector<8x1xf32> -> vector<8x1xf32>
    %97 = vector.broadcast %96 : vector<8x1xf32> to vector<8x8xf32>
    %98 = arith.mulf %93, %97 : vector<8x8xf32>
    %99 = arith.truncf %98 : vector<8x8xf32> to vector<8x8xbf16>
    %c0_32 = arith.constant 0 : index
    %c16 = arith.constant 16 : index
    %100 = vector.load %arg15[%c0_32, %c16] : memref<8x32xbf16, #tpu.memory_space<vmem>>, vector<8x8xbf16>
    tpu.vector_store %arg15[%c0_32, %c16], %99 {strides = array<i32>} : memref<8x32xbf16, #tpu.memory_space<vmem>>, vector<8x8xbf16>,
    %101 = vector.extract_strided_slice %35 {offsets = [0, 24], sizes = [8, 8], strides = [1, 1]} : vector<8x32xf32> to vector<8x8xf32>
    %102 = arith.truncf %101 : vector<8x8xf32> to vector<8x8xbf16>
    %103 = vector.extract_strided_slice %36 {offsets = [0, 24], sizes = [8, 8], strides = [1, 1]} : vector<8x32xf32> to vector<8x8xf32>
    %104 = arith.truncf %103 : vector<8x8xf32> to vector<8x8xbf16>
    %105 = vector.extract_strided_slice %37 {offsets = [0, 24], sizes = [8, 8], strides = [1, 1]} : vector<8x32xf32> to vector<8x8xf32>
    %106 = arith.truncf %105 : vector<8x8xf32> to vector<8x8xbf16>
    %cst_33 = arith.constant dense<0.000000e+00> : vector<8x8xf32>
    %107 = tpu.matmul %102, %104, %cst_33 {dimension_numbers = #tpu.dot_dimension_numbers<[1], [1], [0], [0], [0, 0, 1, 0], [], []>} : vector<8x8xbf16>, vector<8x8xbf16>, vector<8x8xf32> -> vector<8x8xf32>
    %cst_34 = arith.constant dense<0xFF800000> : vector<8xf32>
    %108 = vector.multi_reduction <maximumf>, %107, %cst_34 [1] : vector<8x8xf32> to vector<8xf32>
    %109 = vector.shape_cast %108 : vector<8xf32> to vector<8x1xf32>
    %110 = vector.broadcast %109 : vector<8x1xf32> to vector<8x8xf32>
    %111 = arith.subf %107, %110 : vector<8x8xf32>
    %112 = math.exp %111 : vector<8x8xf32>
    %113 = arith.truncf %112 : vector<8x8xf32> to vector<8x8xbf16>
    %cst_35 = arith.constant dense<0.000000e+00> : vector<8x8xf32>
    %114 = tpu.matmul %113, %106, %cst_35 {dimension_numbers = #tpu.dot_dimension_numbers<[1], [0], [0], [1], [0, 0, 1, 1], [], []>} : vector<8x8xbf16>, vector<8x8xbf16>, vector<8x8xf32> -> vector<8x8xf32>
    %cst_36 = arith.constant dense<0.000000e+00> : vector<8xf32>
    %115 = vector.multi_reduction <add>, %112, %cst_36 [1] : vector<8x8xf32> to vector<8xf32>
    %116 = vector.shape_cast %115 : vector<8xf32> to vector<8x1xf32>
    %117 = tpu.reciprocal %116 {approx = true} : vector<8x1xf32> -> vector<8x1xf32>
    %118 = vector.broadcast %117 : vector<8x1xf32> to vector<8x8xf32>
    %119 = arith.mulf %114, %118 : vector<8x8xf32>
    %120 = arith.truncf %119 : vector<8x8xf32> to vector<8x8xbf16>
    %c0_37 = arith.constant 0 : index
    %c24 = arith.constant 24 : index
    %121 = vector.load %arg15[%c0_37, %c24] : memref<8x32xbf16, #tpu.memory_space<vmem>>, vector<8x8xbf16>
    tpu.vector_store %arg15[%c0_37, %c24], %120 {strides = array<i32>} : memref<8x32xbf16, #tpu.memory_space<vmem>>, vector<8x8xbf16>,
    %c0_38 = arith.constant 0 : index
    %c0_39 = arith.constant 0 : index
    %122 = vector.load %arg15[%c0_38, %c0_39] : memref<8x32xbf16, #tpu.memory_space<vmem>>, vector<8x32xbf16>
    %c0_40 = arith.constant 0 : index
    %c0_41 = arith.constant 0 : index
    %c0_42 = arith.constant 0 : index
    %123 = vector.load %arg6[%c0_40, %c0_41, %c0_42] : memref<1x32x32xbf16, #tpu.memory_space<vmem>>, vector<1x32x32xbf16>
    %124 = vector.shape_cast %123 : vector<1x32x32xbf16> to vector<32x32xbf16>
    %cst_43 = arith.constant dense<0.000000e+00> : vector<8x32xf32>
    %125 = tpu.matmul %122, %124, %cst_43 {dimension_numbers = #tpu.dot_dimension_numbers<[1], [0], [0], [1], [0, 0, 1, 1], [], []>} : vector<8x32xbf16>, vector<32x32xbf16>, vector<8x32xf32> -> vector<8x32xf32>
    %126 = arith.addf %4, %125 : vector<8x32xf32>
    %c0_44 = arith.constant 0 : index
    %c0_45 = arith.constant 0 : index
    %c0_46 = arith.constant 0 : index
    %127 = vector.load %arg7[%c0_44, %c0_45, %c0_46] : memref<1x1x32xf32, #tpu.memory_space<vmem>>, vector<1x1x32xf32>
    %128 = vector.shape_cast %127 : vector<1x1x32xf32> to vector<1x32xf32>
    %129 = vector.broadcast %128 : vector<1x32xf32> to vector<8x32xf32>
    %130 = arith.addf %126, %129 : vector<8x32xf32>
    %c0_47 = arith.constant 0 : index
    %c0_48 = arith.constant 0 : index
    %c0_49 = arith.constant 0 : index
    %131 = vector.load %arg8[%c0_47, %c0_48, %c0_49] : memref<1x1x32xf32, #tpu.memory_space<vmem>>, vector<1x1x32xf32>
    %132 = vector.shape_cast %131 : vector<1x1x32xf32> to vector<1x32xf32>
    %c0_50 = arith.constant 0 : index
    %c0_51 = arith.constant 0 : index
    %c0_52 = arith.constant 0 : index
    %133 = vector.load %arg9[%c0_50, %c0_51, %c0_52] : memref<1x1x32xf32, #tpu.memory_space<vmem>>, vector<1x1x32xf32>
    %134 = vector.shape_cast %133 : vector<1x1x32xf32> to vector<1x32xf32>
    %cst_53 = arith.constant dense<0.000000e+00> : vector<8xf32>
    %135 = vector.multi_reduction <add>, %130, %cst_53 [1] : vector<8x32xf32> to vector<8xf32>
    %136 = vector.shape_cast %135 : vector<8xf32> to vector<8x1xf32>
    %cst_54 = arith.constant 3.200000e+01 : f32
    %137 = vector.broadcast %cst_54 : f32 to vector<8x1xf32>
    %138 = arith.divf %136, %137 : vector<8x1xf32>
    %139 = vector.broadcast %138 : vector<8x1xf32> to vector<8x32xf32>
    %140 = arith.subf %130, %139 : vector<8x32xf32>
    %141 = arith.mulf %140, %140 : vector<8x32xf32>
    %cst_55 = arith.constant dense<0.000000e+00> : vector<8xf32>
    %142 = vector.multi_reduction <add>, %141, %cst_55 [1] : vector<8x32xf32> to vector<8xf32>
    %143 = vector.shape_cast %142 : vector<8xf32> to vector<8x1xf32>
    %cst_56 = arith.constant 3.200000e+01 : f32
    %144 = vector.broadcast %cst_56 : f32 to vector<8x1xf32>
    %145 = arith.divf %143, %144 : vector<8x1xf32>
    %146 = vector.broadcast %138 : vector<8x1xf32> to vector<8x32xf32>
    %147 = arith.subf %130, %146 : vector<8x32xf32>
    %cst_57 = arith.constant 9.99999974E-6 : f32
    %148 = vector.broadcast %cst_57 : f32 to vector<8x1xf32>
    %149 = arith.addf %145, %148 : vector<8x1xf32>
    %150 = math.rsqrt %149 : vector<8x1xf32>
    %151 = vector.broadcast %150 : vector<8x1xf32> to vector<8x32xf32>
    %152 = arith.mulf %147, %151 : vector<8x32xf32>
    %153 = vector.broadcast %132 : vector<1x32xf32> to vector<8x32xf32>
    %154 = arith.mulf %152, %153 : vector<8x32xf32>
    %155 = vector.broadcast %134 : vector<1x32xf32> to vector<8x32xf32>
    %156 = arith.addf %154, %155 : vector<8x32xf32>
    %157 = arith.truncf %156 : vector<8x32xf32> to vector<8x32xbf16>
    %c0_58 = arith.constant 0 : index
    %c0_59 = arith.constant 0 : index
    %c0_60 = arith.constant 0 : index
    %158 = vector.load %arg10[%c0_58, %c0_59, %c0_60] : memref<1x32x64xbf16, #tpu.memory_space<vmem>>, vector<1x32x64xbf16>
    %159 = vector.shape_cast %158 : vector<1x32x64xbf16> to vector<32x64xbf16>
    %cst_61 = arith.constant dense<0.000000e+00> : vector<8x64xf32>
    %160 = tpu.matmul %157, %159, %cst_61 {dimension_numbers = #tpu.dot_dimension_numbers<[1], [0], [0], [1], [0, 0, 1, 1], [], []>} : vector<8x32xbf16>, vector<32x64xbf16>, vector<8x64xf32> -> vector<8x64xf32>
    %c0_62 = arith.constant 0 : index
    %c0_63 = arith.constant 0 : index
    %c0_64 = arith.constant 0 : index
    %161 = vector.load %arg11[%c0_62, %c0_63, %c0_64] : memref<1x1x64xf32, #tpu.memory_space<vmem>>, vector<1x1x64xf32>
    %162 = vector.shape_cast %161 : vector<1x1x64xf32> to vector<1x64xf32>
    %163 = vector.broadcast %162 : vector<1x64xf32> to vector<8x64xf32>
    %164 = arith.addf %160, %163 : vector<8x64xf32>
    %cst_65 = arith.constant 5.000000e-01 : f32
    %165 = vector.broadcast %cst_65 : f32 to vector<8x64xf32>
    %166 = arith.mulf %165, %164 : vector<8x64xf32>
    %cst_66 = arith.constant 4.471500e-02 : f32
    %167 = vector.broadcast %cst_66 : f32 to vector<8x64xf32>
    %168 = arith.mulf %167, %164 : vector<8x64xf32>
    %169 = arith.mulf %168, %164 : vector<8x64xf32>
    %170 = arith.mulf %169, %164 : vector<8x64xf32>
    %171 = arith.addf %164, %170 : vector<8x64xf32>
    %cst_67 = arith.constant 0.797884583 : f32
    %172 = vector.broadcast %cst_67 : f32 to vector<8x64xf32>
    %173 = arith.mulf %172, %171 : vector<8x64xf32>
    %174 = math.tanh %173 : vector<8x64xf32>
    %cst_68 = arith.constant 1.000000e+00 : f32
    %175 = vector.broadcast %cst_68 : f32 to vector<8x64xf32>
    %176 = arith.addf %175, %174 : vector<8x64xf32>
    %177 = arith.mulf %166, %176 : vector<8x64xf32>
    %178 = arith.truncf %177 : vector<8x64xf32> to vector<8x64xbf16>
    %c0_69 = arith.constant 0 : index
    %c0_70 = arith.constant 0 : index
    %c0_71 = arith.constant 0 : index
    %179 = vector.load %arg12[%c0_69, %c0_70, %c0_71] : memref<1x64x32xbf16, #tpu.memory_space<vmem>>, vector<1x64x32xbf16>
    %180 = vector.shape_cast %179 : vector<1x64x32xbf16> to vector<64x32xbf16>
    %cst_72 = arith.constant dense<0.000000e+00> : vector<8x32xf32>
    %181 = tpu.matmul %178, %180, %cst_72 {dimension_numbers = #tpu.dot_dimension_numbers<[1], [0], [0], [1], [0, 0, 1, 1], [], []>} : vector<8x64xbf16>, vector<64x32xbf16>, vector<8x32xf32> -> vector<8x32xf32>
    %c0_73 = arith.constant 0 : index
    %c0_74 = arith.constant 0 : index
    %c0_75 = arith.constant 0 : index
    %182 = vector.load %arg13[%c0_73, %c0_74, %c0_75] : memref<1x1x32xf32, #tpu.memory_space<vmem>>, vector<1x1x32xf32>
    %183 = vector.shape_cast %182 : vector<1x1x32xf32> to vector<1x32xf32>
    %184 = vector.broadcast %183 : vector<1x32xf32> to vector<8x32xf32>
    %185 = arith.addf %181, %184 : vector<8x32xf32>
    %186 = arith.addf %130, %185 : vector<8x32xf32>
    %c0_76 = arith.constant 0 : index
    %c0_77 = arith.constant 0 : index
    %c0_78 = arith.constant 0 : index
    %187 = vector.load %arg14[%c0_76, %c0_77, %c0_78] : memref<1x8x32xf32, #tpu.memory_space<vmem>>, vector<1x8x32xf32>
    %188 = vector.shape_cast %187 : vector<1x8x32xf32> to vector<8x32xf32>
    %189 = vector.shape_cast %186 : vector<8x32xf32> to vector<1x8x32xf32>
    tpu.vector_store %arg14[%c0_76, %c0_77, %c0_78], %189 {strides = array<i32>} : memref<1x8x32xf32, #tpu.memory_space<vmem>>, vector<1x8x32xf32>,
    return
  }
  func.func @transform_0(%arg0: i32, %arg1: i32) -> (i32, i32, i32) {
    %c0_i32 = arith.constant 0 : i32
    %c0_i32_0 = arith.constant 0 : i32
    %c0_i32_1 = arith.constant 0 : i32
    return %arg0, %c0_i32, %c0_i32_0 : i32, i32, i32
  }
  func.func @transform_1(%arg0: i32, %arg1: i32) -> (i32, i32, i32) {
    %c0_i32 = arith.constant 0 : i32
    %c0_i32_0 = arith.constant 0 : i32
    %c0_i32_1 = arith.constant 0 : i32
    return %arg1, %c0_i32, %c0_i32_0 : i32, i32, i32
  }
  func.func @transform_2(%arg0: i32, %arg1: i32) -> (i32, i32, i32) {
    %c0_i32 = arith.constant 0 : i32
    %c0_i32_0 = arith.constant 0 : i32
    %c0_i32_1 = arith.constant 0 : i32
    return %arg1, %c0_i32, %c0_i32_0 : i32, i32, i32
  }
  func.func @transform_3(%arg0: i32, %arg1: i32) -> (i32, i32, i32) {
    %c0_i32 = arith.constant 0 : i32
    %c0_i32_0 = arith.constant 0 : i32
    %c0_i32_1 = arith.constant 0 : i32
    return %arg1, %c0_i32, %c0_i32_0 : i32, i32, i32
  }
  func.func @transform_4(%arg0: i32, %arg1: i32) -> (i32, i32, i32) {
    %c0_i32 = arith.constant 0 : i32
    %c0_i32_0 = arith.constant 0 : i32
    %c0_i32_1 = arith.constant 0 : i32
    return %arg1, %c0_i32, %c0_i32_0 : i32, i32, i32
  }
  func.func @transform_5(%arg0: i32, %arg1: i32) -> (i32, i32, i32) {
    %c0_i32 = arith.constant 0 : i32
    %c0_i32_0 = arith.constant 0 : i32
    %c0_i32_1 = arith.constant 0 : i32
    return %arg1, %c0_i32, %c0_i32_0 : i32, i32, i32
  }
  func.func @transform_6(%arg0: i32, %arg1: i32) -> (i32, i32, i32) {
    %c0_i32 = arith.constant 0 : i32
    %c0_i32_0 = arith.constant 0 : i32
    %c0_i32_1 = arith.constant 0 : i32
    return %arg1, %c0_i32, %c0_i32_0 : i32, i32, i32
  }
  func.func @transform_7(%arg0: i32, %arg1: i32) -> (i32, i32, i32) {
    %c0_i32 = arith.constant 0 : i32
    %c0_i32_0 = arith.constant 0 : i32
    %c0_i32_1 = arith.constant 0 : i32
    return %arg1, %c0_i32, %c0_i32_0 : i32, i32, i32
  }
  func.func @transform_8(%arg0: i32, %arg1: i32) -> (i32, i32, i32) {
    %c0_i32 = arith.constant 0 : i32
    %c0_i32_0 = arith.constant 0 : i32
    %c0_i32_1 = arith.constant 0 : i32
    return %arg1, %c0_i32, %c0_i32_0 : i32, i32, i32
  }
  func.func @transform_9(%arg0: i32, %arg1: i32) -> (i32, i32, i32) {
    %c0_i32 = arith.constant 0 : i32
    %c0_i32_0 = arith.constant 0 : i32
    %c0_i32_1 = arith.constant 0 : i32
    return %arg1, %c0_i32, %c0_i32_0 : i32, i32, i32
  }
  func.func @transform_10(%arg0: i32, %arg1: i32) -> (i32, i32, i32) {
    %c0_i32 = arith.constant 0 : i32
    %c0_i32_0 = arith.constant 0 : i32
    %c0_i32_1 = arith.constant 0 : i32
    return %arg1, %c0_i32, %c0_i32_0 : i32, i32, i32
  }
  func.func @transform_11(%arg0: i32, %arg1: i32) -> (i32, i32, i32) {
    %c0_i32 = arith.constant 0 : i32
    %c0_i32_0 = arith.constant 0 : i32
    %c0_i32_1 = arith.constant 0 : i32
    return %arg1, %c0_i32, %c0_i32_0 : i32, i32, i32
  }
  func.func @transform_12(%arg0: i32, %arg1: i32) -> (i32, i32, i32) {
    %c0_i32 = arith.constant 0 : i32
    %c0_i32_0 = arith.constant 0 : i32
    %c0_i32_1 = arith.constant 0 : i32
    return %arg0, %c0_i32, %c0_i32_0 : i32, i32, i32
  }
}

</mosaic_0001>

<bundles_post_ra>
// kernel: tpu_custom_call.1
= control target key start
LH: loop header
LB: loop body
LE: loop exit
PB: predicated region body
PF: predicated region fallthrough
CT: control target
= control target key end

     0   :  { %s2727_s0 = inlined_call_operand.hbm [shape: f32[2,8,32], index: 0, kind: input, shape index: {}]   ;;  %s2728_s1 = inlined_call_operand.hbm [shape: f32[2,1,32], index: 1, kind: input, shape index: {}]   ;;  %s2729_s2 = inlined_call_operand.vmem [shape: f32[2,1,32], index: 2, kind: input, shape index: {}]   ;;  %s2730_s3 = inlined_call_operand.vmem [shape: bf16[2,32,96], index: 3, kind: input, shape index: {}]   ;;  %s2731_s4 = inlined_call_operand.vmem [shape: bf16[2,32,32], index: 4, kind: input, shape index: {}]   ;;  %s2732_s5 = inlined_call_operand.vmem [shape: f32[2,1,32], index: 5, kind: input, shape index: {}]   ;;  %s2733_s6 = inlined_call_operand.vmem [shape: f32[2,1,32], index: 6, kind: input, shape index: {}]   ;;  %s2734_s7 = inlined_call_operand.vmem [shape: f32[2,1,32], index: 7, kind: input, shape index: {}]   ;;  %s2735_s8 = inlined_call_operand.vmem [shape: bf16[2,32,64], index: 8, kind: input, shape index: {}]   ;;  %s2736_s9 = inlined_call_operand.vmem [shape: f32[2,1,64], index: 9, kind: input, shape index: {}]   ;;  %s2737_s10 = inlined_call_operand.vmem [shape: bf16[2,64,32], index: 10, kind: input, shape index: {}]   ;;  %s2738_s11 = inlined_call_operand.vmem [shape: f32[2,1,32], index: 11, kind: input, shape index: {}]   ;;  %s2739_s12 = inlined_call_operand.hbm [shape: f32[2,8,32], index: 12, kind: output, shape index: {}]  }
   0x1   :  { %2759 = sst [smem:[#allocation28_spill]] %s2727_s0 }
   0x2   :  { %2760 = sst [smem:[#allocation29_spill]] %s2728_s1 }
   0x3   :  { %2761 = sst [smem:[#allocation30_spill]] %s2730_s3 }
   0x4   :  { %2762 = sst [smem:[#allocation31_spill]] %s2731_s4 }
   0x5   :  { %2763 = sst [smem:[#allocation32_spill]] %s2734_s7 }
   0x6   :  { %2764 = sst [smem:[#allocation33_spill]] %s2735_s8 }
   0x7   :  { %2765 = sst [smem:[#allocation34_spill]] %s2736_s9 }
   0x8   :  { %2766 = sst [smem:[#allocation35_spill]] %s2737_s10 }
   0x9   :  { %2767 = sst [smem:[#allocation36_spill]] %s2738_s11 }
   0xa   :  { %2768 = sst [smem:[#allocation37_spill]] %s2739_s12 }
   0xb   :  { %17 = vsyncpa [#allocation4], 0 }
   0xc   :  { %19 = vsyncpa [#allocation4 + $0x1], 0 }
   0xd   :  { %20 = vsyncpa [#allocation7], 0 }
   0xe   :  { %22 = vsyncpa [#allocation7 + $0x1], 0 }
   0xf   :  { %23 = vsyncpa [#allocation5], 0 }
  0x10   :  { %25 = vsyncpa [#allocation5 + $0x1], 0  ;;  %s2285_s21 = smov 0   ;;  %s2287_s22 = smov 0  }
  0x11   :  { %s2289_s23 = smov 0   ;;  %s2291_s24 = smov 0  }
  0x12   :  { %s2293_s25 = smov 0   ;;  %s2295_s26 = smov 0  }
  0x13   :  { %s2297_s27 = smov 0   ;;  %s2299_s28 = smov 0  }
  0x14   :  { %s2301_s29 = smov 0   ;;  %s2303_s30 = smov 0  }
  0x15   :  { %s2305_s13 = smov 0  }
  0x16 LB: > { %2769 = sst [smem:[#allocation12_spill]] %s2163_s22  ;;  %s1688_s14 = sadd.s32 4294967295, %s2199_s13   ;;  %s2199_s13 = sphi %s2305_s13, %s31_s13   ;;  %s2195_s30 = sphi %s2303_s30, %s2830_s30   ;;  %s2191_s29 = sphi %s2301_s29, %s2829_s29   ;;  %s2187_s28 = sphi %s2299_s28, %s2828_s28   ;;  %s2183_s27 = sphi %s2297_s27, %s2827_s27   ;;  %s2179_s26 = sphi %s2295_s26, %s2826_s26   ;;  %s2175_s25 = sphi %s2293_s25, %s2825_s25   ;;  %s2171_s24 = sphi %s2291_s24, %s2824_s24   ;;  %s2167_s23 = sphi %s2289_s23, %s2823_s23   ;;  %s2163_s22 = sphi %s2287_s22, %s2822_s22   ;;  %s2159_s21 = sphi %s2285_s21, %s2821_s21  }
  0x17   : > { %2770 = sst [smem:[#allocation13_spill]] %s2167_s23  ;;  %s1689_s15 = sadd.s32 4294967294, %s2199_s13  }
  0x18   : > { %2771 = sst [smem:[#allocation14_spill]] %s2171_s24  ;;  %p57_p0 = scmp.ne.s32.totalorder %s2179_s26, %s2175_s25 }
  0x19   : > { %2772 = sst [smem:[#allocation15_spill]] %s2175_s25  ;;  %p2745_p1 = scmp.eq.s32.totalorder %s2199_s13, 0 }
  0x1a   : > { %2773 = sst [smem:[#allocation16_spill]] %s2179_s26  ;;  %p63_p2 = scmp.ne.s32.totalorder %s2175_s25, %s2171_s24 }
  0x1b   : > { %2774 = sst [smem:[#allocation17_spill]] %s2187_s28  ;;  %p2348_p3 = scmp.eq.s32.totalorder %s1688_s14, 0 }
  0x1c   : > { %2775 = sst [smem:[#allocation18_spill]] %s2191_s29  ;;  %p2354_p4 = por %p2745_p1, %p57_p0 }
  0x1d   : > { %2776 = sst [smem:[#allocation19_spill]] %s2195_s30  ;;  %p373_p5 = scmp.eq.s32.totalorder %s1688_s14, 3 }
  0x1e   : > { %2777 = sst [smem:[#allocation20_spill]] %s2199_s13  ;;  %p2360_p6 = por %p2348_p3, %p63_p2 }
  0x1f   : > { %p379_p7 = scmp.eq.s32.totalorder %s1689_s15, 3  ;;  %p2364_p8 = por %p373_p5, %p57_p0 }
  0x20   : > { %p2746_p10 = scmp.lt.s32.totalorder %s2199_s13, 4  ;;  %s399_s24 = sand.u32 1, %s2179_s26  }
  0x21   : > { %s2781_s20 = scalar_select %p2364_p8, 1, 0 }
  0x22   : > { %p2368_p9 = por %p379_p7, %p63_p2  ;;  %s1693_s12 = sshll.u32 %s2195_s30, 7 }
  0x23   : > { %2782 = sst [smem:[#allocation21_spill]] %s2781_s20  ;;  %s1692_s28 = sshll.u32 %s399_s24, 3 }
  0x24   : > { %s2783_s16 = scalar_select %p2368_p9, 1, 0 }
  0x25   : > { %s2785_s0 = sld [smem:[#allocation28_spill]]  ;;  %s403_s9 = scalar_lea.vmem [#allocation3], %s1692_s28 }
  0x26   : > { %2784 = sst [smem:[#allocation22_spill]] %s2783_s16  ;;  %s410_s8 = sshll.u32 %s403_s9, 4  ;;  %s411_s8 = int_to_ptr.vmem [resolvable:$true] %s410_s8 }
  0x27   : > { %p2382_p11 = pnand %p2746_p10, %p2354_p4  ;;  %p1695_p12 = scmp.ge.s32.totalorder %s2199_s13, 1 }
  0x28   : > { %p500_p13 = scmp.lt.s32.totalorder %s2199_s13, 5  ;;  %s400_s16 = scalar_lea.sflag [#allocation4], %s399_s24 }
  0x29   : > { %p2021_p0 = pneg %p2382_p11  ;;  %s2032_s20 = scalar_lea.vmem %s411_s8, 128 }
  0x2a   : > { %p2033_p2 = scmp.ne.s32.totalorder %s411_s8, %s2032_s20  ;;  %s2201_s11 = smov [#allocation3]  }
  0x2b   : > { %s408_s10 = scalar_lea.hbm %s2785_s0, %s1693_s12  ;;  %s2037_s12 = sshll.u32 %s2201_s11, 4  ;;  %s2038_s12 = int_to_ptr.vmem [resolvable:$false] %s2037_s12 }
  0x2c   : > { %p2035_p5 = pnand %p2033_p2, %p2021_p0  ;;  %s2039_s9 = scalar_lea.vmem %s2038_s12, 256 }
  0x2d   : > { %p2040_p1 = scmp.lt.s32.totalorder %s411_s8, %s2038_s12  ;;  %p2041_p4 = scmp.lt.s32.totalorder %s2039_s9, %s2032_s20 }
  0x2e   : > { %p2036_p7 = pneg %p2035_p5 }
  0x2f   : > { %p2042_p10 = por %p2041_p4, %p2040_p1 }
  0x31   : > { %p2043_p9 = pnand %p2042_p10, %p2036_p7 }
  0x33   : > { %2046 = shalt.err (!%p2043_p9)
}
  0x34   : > { %1873 = dma.hbm_to_vmem [thread:$0]  (!%p2382_p11), %s408_s10, 128, %s411_s8, %s400_s16  }
  0x35   : > { %s50_s24 = sadd.s32 1, %s2179_s26  ;;  %p2397_p1 = pnand %p1695_p12, %p500_p13 }
  0x36   : > { %s40_s18 = sadd.s32 1, %s2191_s29  ;;  %s76_s20 = sadd.s32 1, %s2167_s23 }
  0x37   : > { %p41_p9 = scmp.ge.s32.totalorder %s40_s18, 2  ;;  %p89_p10 = scmp.ne.s32.totalorder %s2163_s22, %s2159_s21 }
  0x38   : > { %s2789_s14 = sadd.s32 1, %s2195_s30  ;;  %p83_p11 = scmp.ne.s32.totalorder %s2167_s23, %s2163_s22 }
  0x39   : > { %s2832_s18 = smov (%p41_p9, %s40_s18), 0  ;;  %s2834_s14 = smov (!%p41_p9, %s2789_s14), %s2195_s30 }
  0x3a   : > { %2788 = sst [smem:[#allocation23_spill]] %s2832_s18  ;;  %s73_s8 = ssub.s32 %s2191_s29, %s2832_s18 }
  0x3b   : > { %p45_p0 = scmp.ge.s32.totalorder %s2834_s14, 2  ;;  %p74_p12 = scmp.eq.s32.totalorder %s73_s8, 0 }
  0x3c   : > { %p2416_p13 = por %p89_p10, %p2348_p3  ;;  %s417_s16 = sand.u32 1, %s2167_s23  }
  0x3d   : > { %s2836_s14 = smov (%p45_p0, %s2834_s14), 0  ;;  %p2793_p2 = scmp.eq.s32.totalorder %s2199_s13, 0 }
  0x3e   : > { %2791 = sst [smem:[#allocation24_spill]] %s2836_s14  ;;  %s47_s15 = ssub.s32 %s2195_s30, %s2836_s14 }
  0x3f   : > { %s2424_s21 = scalar_select %p74_p12, %s2167_s23, %s76_s20  }
  0x40   : > { %p85_p5 = por %p83_p11, %p2793_p2  ;;  %p48_p7 = scmp.eq.s32.totalorder %s47_s15, 0 }
  0x41   : > { %2792 = sst [smem:[#allocation25_spill]] %s2424_s21  ;;  %s1694_s11 = sshll.u32 %s2191_s29, 4 }
  0x42   : > { %s420_s12 = scalar_lea.vmem [#allocation6], %s417_s16  ;;  %s2795_s1 = sld [smem:[#allocation29_spill]] }
  0x43   : > { %s427_s9 = sshll.u32 %s420_s12, 4  ;;  %p2796_p3 = scmp.lt.s32.totalorder %s2199_s13, 4  ;;  %s428_s9 = int_to_ptr.vmem [resolvable:$true] %s427_s9 }
  0x44   : > { %s2432_s0 = scalar_select %p48_p7, %s2179_s26, %s50_s24  }
  0x45   : > { %p2439_p4 = pnand %p2796_p3, %p85_p5  ;;  %s418_s20 = scalar_lea.sflag [#allocation7], %s417_s16 }
  0x46   : > { %2794 = sst [smem:[#allocation26_spill]] %s2432_s0  ;;  %s2060_s15 = scalar_lea.vmem %s428_s9, 16 }
  0x47   : > { %p2049_p9 = pneg %p2439_p4  ;;  %p2061_p10 = scmp.ne.s32.totalorder %s428_s9, %s2060_s15 }
  0x48   : > { %s425_s18 = scalar_lea.hbm %s2795_s1, %s1694_s11  ;;  %s2202_s24 = smov [#allocation6]  }
  0x49   : > { %p2063_p11 = pnand %p2061_p10, %p2049_p9  ;;  %s2065_s12 = sshll.u32 %s2202_s24, 4  ;;  %s2066_s12 = int_to_ptr.vmem [resolvable:$false] %s2065_s12 }
  0x4a   : > { %s2067_s14 = scalar_lea.vmem %s2066_s12, 32  ;;  %p2068_p12 = scmp.lt.s32.totalorder %s428_s9, %s2066_s12 }
  0x4b   : > { %p2064_p0 = pneg %p2063_p11  ;;  %p2069_p2 = scmp.lt.s32.totalorder %s2067_s14, %s2060_s15 }
  0x4d   : > { %p2070_p7 = por %p2069_p2, %p2068_p12 }
  0x4f   : > { %p2071_p8 = pnand %p2070_p7, %p2064_p0 }
  0x51   : > { %2074 = shalt.err (!%p2071_p8)
}
  0x52   : > { %1876 = dma.hbm_to_vmem [thread:$0]  (!%p2439_p4), %s425_s18, 16, %s428_s9, %s418_s20  }
  0x53   : > { %504 = sbr.rel (%p2397_p1) target bundleno = 2423 (0x977), region = 68 }
  0x58   : > { %s2450_s16 = sand.u32 1, %s2175_s25  }
  0x59   : > { %2798 = sst [smem:[#allocation27_spill]] %s2450_s16  ;;  %s1696_s11 = sshll.u32 %s2450_s16, 3 }
  0x5a   : > { %s507_s17 = scalar_lea.sflag [#allocation4], %s2450_s16  ;;  %s510_s8 = scalar_lea.vmem [#allocation3], %s1696_s11 }
  0x5b   : > { %2146 = dma.done.wait (%p2360_p6), %s507_s17, 128  }
  0x5c   : > { %2148 = vsyncadd (%p2360_p6), %s507_s17, 4294967168  ;;  %s515_s7 = sand.u32 1, %s2163_s22  }
  0x5d   : > { %s516_s18 = scalar_lea.sflag [#allocation7], %s515_s7  ;;  %s2459_s28 = scalar_lea.vmem [#allocation6], %s515_s7 }
  0x5e   : > { %2150 = dma.done.wait (%p2416_p13), %s516_s18, 16  }
  0x5f   : > { %2152 = vsyncadd (%p2416_p13), %s516_s18, 4294967280  ;;  %p601_p8 = scmp.lt.s32.totalorder %s2183_s27, 1  ;;  %s2799_s3 = sld [smem:[#allocation30_spill]] }
  0x60   : > { %s2800_s4 = sld [smem:[#allocation31_spill]]  ;;  %p1706_p6 = scmp.ne.s32.totalorder %s2183_s27, 0 }
  0x61   : > { %s2467_s14 = scalar_select %p601_p8, %s2183_s27, 1 }
  0x62   : > { %s2801_s25 = sld [smem:[#allocation32_spill]] }
  0x63   : > { %s1743_s15 = sshll.u32 %s2467_s14, 4  ;;  %s1746_s13 = sshll.u32 %s2467_s14, 5 }
  0x64   : > { %s2804_s1 = sld [smem:[#allocation35_spill]] }
  0x65   : > { %s2477_s12 = scalar_lea.vmem %s2799_s3, %s1743_s15  ;;  %s2802_s3 = sld [smem:[#allocation33_spill]] }
  0x66   : > { %s2482_s18 = scalar_lea.vmem %s2800_s4, %s1743_s15  ;;  %s2803_s4 = sld [smem:[#allocation34_spill]] }
  0x67   : > { %s2805_s0 = sld [smem:[#allocation36_spill]] }
  0x68   : > { %s622_s21 = scalar_lea.vmem %s2801_s25, %s2467_s14  ;;  %s2515_s25 = scalar_lea.vmem [#allocation8], %s1696_s11 }
  0x69   : > { %643 = sbr.rel (%p1706_p6) target bundleno = 112 (0x70), region = 80 }
  0x6a   : > { %s2509_s16 = scalar_lea.vmem %s2804_s1, %s1746_s13 }
  0x6b   : > { %s2499_s23 = scalar_lea.vmem %s2802_s3, %s1743_s15 }
  0x6c   : > { %s630_s22 = scalar_lea.vmem %s2803_s4, %s2467_s14 }
  0x6d   : > { %s638_s26 = scalar_lea.vmem %s2805_s0, %s2467_s14 }
  0x6e   : > { %v644_v0 = vld [vmem:[%s510_s8] sm:$0xff]  ;;  %vm645_vm0 = vcmask 261120  }
  0x6f   : > { %646 = vst.msk [vmem:[%s2515_s25] sm:$0xff] %vm645_vm0, %v644_v0 }
  0x70 PF: > { %vm650_vm1 = vcmask 261120   ;;  %v1987_v8 = vld [vmem:[%s2477_s12 + $0x8] sm:$0xff]   ;;  %v2203_v9 = vmov 0.0   ;;  %vm2204_vm2 = vmmov 0   ;;  %v1988_v10 = vld [vmem:[%s2477_s12] sm:$0xff]   ;;  %s2806_s3 = scalar_lea.vmem %s2729_s2, %s2467_s14  ;;  %s2205_s4 = smov 120  }
  0x71   : > { %1780 = vmatprep.subr.bf16.mxu0 %v2203_v9  ;;  %1784 = vmatprep.mubr.msk.bf16.mxu0 %vm2204_vm2, %v2203_v9  ;;  %v1707_v15 = vld [vmem:[%s2459_s28] ss:$0 sm:$0xff]  ;;  %s2206_s27 = smov 96   ;;  %s2207_s13 = smov 88   ;;  %vm743_vm3 = vcmask 64512   ;;  %vm802_vm4 = vcmask 1043456  }
  0x72   : > { %1781 = vmatpush3.bf16.msra.mxu0 %v1987_v8  ;;  %1788 = vmatprep.subr.bf16.mxu1 %v2203_v9  ;;  %v1708_v17 = vld [vmem:[%s2806_s3] ss:$0 sm:$0xff]  ;;  %s2208_s11 = smov 80   ;;  %s2209_s8 = smov 112   ;;  %vm852_vm5 = vcmask 60416   ;;  %vm971_vm6 = vcmask 126016  }
  0x73   : > { %1782 = vmatprep.subr.bf16.mxu0 %v2203_v9  ;;  %1790 = vmatprep.mubr.msk.bf16.mxu1 %vm2204_vm2, %v2203_v9  ;;  %s2210_s28 = smov 72   ;;  %s2211_s20 = smov 104   ;;  %vm1090_vm7 = vcmask 191616   ;;  %vm1209_vm8 = vcmask 257216   ;;  %vm1425_vm9 = vcmask 523264  }
  0x74   : > { %s2212_s15 = smov 64   ;;  %s2213_s12 = smov 56  }
  0x75   : > { %s2214_s10 = smov 48   ;;  %s2215_s24 = smov 40  }
  0x76   : > { %v2520_v1 = vld [vmem:[%s2515_s25] sm:$0xff]  ;;  %1783 = vmatpush3.bf16.msra.mxu0 %v1988_v10  ;;  %s2216_s17 = smov 8   ;;  %s2217_s7 = smov 16  }
  0x77   : > { %v651_v2 = vsel %vm650_vm1, %v2520_v1, 0.0  ;;  %1794 = vmatprep.subr.bf16.mxu0 %v2203_v9  ;;  %s2218_s9 = smov 24   ;;  %s2807_s29 = scalar_lea.vmem %s2732_s5, %s2467_s14 }
  0x78   : > { %652 = vadd.xlane.f32.xlu0 %v651_v2  ;;  %s2808_s1 = scalar_lea.vmem %s2733_s6, %s2467_s14 }
 0x101   : > { %v653_v3 = vpop.xlane.xlu0 %652 }
 0x102   : > { %v655_v4 = vmul.f32 0.03125, %v653_v3 }
 0x104   : > { %v656_v5 = vsub.f32 %v2520_v1, %v655_v4 }
 0x106   : > { %v657_v6 = vmul.f32 %v656_v5, %v656_v5 }
 0x108   : > { %v658_v7 = vsel %vm650_vm1, %v657_v6, 0.0 }
 0x109   : > { %659 = vadd.xlane.f32.xlu0 %v658_v7 }
 0x192   : > { %v660_v11 = vpop.xlane.xlu0 %659 }
 0x193   : > { %v661_v12 = vmul.f32 0.03125, %v660_v11 }
 0x195   : > { %v662_v13 = vadd.f32 1e-05, %v661_v12 }
 0x197   : > { %1997 = vrsqrt.f32 %v662_v13 }
 0x1a4   : > { %v1998_v14 = vpop.eup %1997 }
 0x1a5   : > { %v664_v16 = vmul.f32 %v1998_v14, %v656_v5 }
 0x1a7   : > { %v671_v18 = vmul.f32 %v1707_v15, %v664_v16 }
 0x1a9   : > { %v678_v19 = vadd.f32 %v1708_v17, %v671_v18 }
 0x1ab   : > { %v679_v20 = vpack.c.bf16 %v678_v19, %v678_v19 }
 0x1ad   : > { %1785 = vmatmul.mubr.msk.bf16.vlgmr.msra.gmra.mxu0 %vm650_vm1, %v679_v20 }
 0x1ae   : > { %1796 = vmatprep.mubr.msk.bf16.mxu0 %vm2204_vm2, %v2203_v9 }
 0x26d   : > { %v733_v21 = vpop.f32.mrf.mxu0 }
 0x26e   : > { %v2545_v22 = vpack.c.bf16 %v733_v21, %v733_v21 }
 0x26f   : > { %v1786_v23 = vpop.f32.mrf.mxu0 }
 0x270   : > { %854 = vrot.lane.b32.xlu0 %v2545_v22, %s2205_s4  ;;  %741 = vrot.lane.b32.xlu1 %v2545_v22, %s2206_s27 }
 0x271   : > { %v736_v24 = vpop.f32.mrf.mxu0 }
 0x273   : > { %v1787_v25 = vpop.f32.mrf.mxu0 }
 0x274   : > { %856 = vrot.lane.b32.xlu1 %v2545_v22, %s2207_s13 }
 0x278   : > { %975 = vrot.lane.b32.xlu1 %v2545_v22, %s2208_s11  ;;  %s2811_s11 = sld [smem:[#allocation17_spill]] }
 0x27c   : > { %973 = vrot.lane.b32.xlu1 %v2545_v22, %s2209_s8 }
 0x280   : > { %1094 = vrot.lane.b32.xlu1 %v2545_v22, %s2210_s28 }
 0x284   : > { %1092 = vrot.lane.b32.xlu1 %v2545_v22, %s2211_s20  ;;  %s2814_s20 = sld [smem:[#allocation21_spill]] }
 0x28a   : > { %p2816_p13 = scmp.ne.s32.totalorder %s2814_s20, 0 }
 0x2e2   : > { %v742_v26 = vpop.permute.xlu1 %741  ;;  %v855_v31 = vpop.permute.xlu0 %854 }
 0x2e3   : > { %v748_v27 = vsel %vm743_vm3, %v742_v26, 0 }
 0x2e4   : > { %1789 = vmatpush3.bf16.xpose.msra.mxu1 %v748_v27 }
 0x2e5   : > { %1800 = vmatprep.subr.bf16.mxu1 %v2203_v9 }
 0x2e6   : > { %v857_v28 = vpop.permute.xlu1 %856 }
 0x2e7   : > { %v862_v29 = vsel %vm743_vm3, %v857_v28, 0 }
 0x2ea   : > { %v976_v30 = vpop.permute.xlu1 %975 }
 0x2eb   : > { %1791 = vmatmul.mubr.msk.bf16.vlgmr.msra.gmra.mxu1 %vm743_vm3, %v2545_v22  ;;  %v981_v33 = vsel %vm743_vm3, %v976_v30, 0 }
 0x2ec   : > { %1801 = vmatpush3.bf16.xpose.msra.mxu1 %v862_v29  ;;  %1802 = vmatprep.mubr.msk.bf16.mxu1 %vm2204_vm2, %v2203_v9 }
 0x2ed   : > { %1812 = vmatprep.subr.bf16.mxu1 %v2203_v9 }
 0x2ee   : > { %v974_v32 = vpop.permute.xlu1 %973 }
 0x2f2   : > { %v1095_v34 = vpop.permute.xlu1 %1094 }
 0x2f3   : > { %1803 = vmatmul.mubr.msk.bf16.vlgmr.msra.gmra.mxu1 %vm743_vm3, %v855_v31  ;;  %v1100_v35 = vsel %vm743_vm3, %v1095_v34, 0 }
 0x2f4   : > { %1813 = vmatpush3.bf16.xpose.msra.mxu1 %v981_v33  ;;  %1814 = vmatprep.mubr.msk.bf16.mxu1 %vm2204_vm2, %v2203_v9 }
 0x2f5   : > { %1824 = vmatprep.subr.bf16.mxu1 %v2203_v9 }
 0x2f6   : > { %v1093_v36 = vpop.permute.xlu1 %1092 }
 0x2fb   : > { %1815 = vmatmul.mubr.msk.bf16.vlgmr.msra.gmra.mxu1 %vm743_vm3, %v974_v32 }
 0x2fc   : > { %1825 = vmatpush3.bf16.xpose.msra.mxu1 %v1100_v35  ;;  %1826 = vmatprep.mubr.msk.bf16.mxu1 %vm2204_vm2, %v2203_v9 }
 0x2fd   : > { %1836 = vmatprep.subr.bf16.mxu1 %v2203_v9 }
 0x303   : > { %1827 = vmatmul.mubr.msk.bf16.vlgmr.msra.gmra.mxu1 %vm743_vm3, %v1093_v36 }
 0x304   : > { %1840 = vmatprep.mubr.msk.bf16.mxu1 %vm2204_vm2, %v2203_v9 }
 0x3ab   : > { %v784_v37 = vpop.f32.mrf.mxu1 }
 0x3ac   : > { %v790_v38 = vsel %vm743_vm3, %v784_v37, -inf }
 0x3ad   : > { %791 = vmax.xlane.f32.xlu1 %v790_v38  ;;  %v1792_v39 = vpop.f32.mrf.mxu1 }
 0x3af   : > { %v787_v40 = vpop.f32.mrf.mxu1 }
 0x3b1   : > { %v1793_v41 = vpop.f32.mrf.mxu1 }
 0x3b3   : > { %v898_v42 = vpop.f32.mrf.mxu1 }
 0x3b4   : > { %v904_v43 = vsel %vm743_vm3, %v898_v42, -inf }
 0x3b5   : > { %905 = vmax.xlane.f32.xlu0 %v904_v43  ;;  %v1804_v44 = vpop.f32.mrf.mxu1 }
 0x3b7   : > { %v901_v45 = vpop.f32.mrf.mxu1 }
 0x3b9   : > { %v1805_v46 = vpop.f32.mrf.mxu1 }
 0x3bb   : > { %v1017_v47 = vpop.f32.mrf.mxu1 }
 0x3bc   : > { %v1023_v56 = vsel %vm743_vm3, %v1017_v47, -inf }
 0x3bd   : > { %v1816_v48 = vpop.f32.mrf.mxu1 }
 0x3be   : > { %797 = vrot.lane.b32.xlu1 %v2545_v22, %s2212_s15  ;;  %s1740_s15 = sshll.u32 %s2811_s11, 7 }
 0x3bf   : > { %v1020_v49 = vpop.f32.mrf.mxu1 }
 0x3c1   : > { %v1817_v50 = vpop.f32.mrf.mxu1 }
 0x3c2   : > { %v1990_v50 = vld [vmem:[%s2482_s18] sm:$0xff]  }
 0x3c3   : > { %v1136_v51 = vpop.f32.mrf.mxu1 }
 0x3c4   : > { %v1142_v52 = vsel %vm743_vm3, %v1136_v51, -inf }
 0x3c5   : > { %1143 = vmax.xlane.f32.xlu0 %v1142_v52  ;;  %v1828_v53 = vpop.f32.mrf.mxu1 }
 0x3c7   : > { %v1139_v54 = vpop.f32.mrf.mxu1 }
 0x3c9   : > { %v1829_v55 = vpop.f32.mrf.mxu1 }
 0x3db   : > { %911 = vrot.lane.b32.xlu0 %v2545_v22, %s2213_s12  ;;  %s1485_s12 = sshll.u32 %s2515_s25, 4  ;;  %s2665_s12 = int_to_ptr.vmem [resolvable:$true] %s1485_s12 }
 0x3e2   : > { %1024 = vmax.xlane.f32.xlu1 %v1023_v56 }
 0x3f3   : > { %1030 = vrot.lane.b32.xlu1 %v2545_v22, %s2214_s10 }
 0x3f7   : > { %1149 = vrot.lane.b32.xlu1 %v2545_v22, %s2215_s24 }
 0x436   : > { %v792_v57 = vpop.xlane.xlu1 %791 }
 0x437   : > { %v793_v58 = vsub.f32 %v784_v37, %v792_v57 }
 0x439   : > { %v794_v59 = vmul.f32 1.442695, %v793_v58 }
 0x43a   : > { %v798_v60 = vpop.permute.xlu1 %797 }
 0x43b   : > { %1999 = vpow2.f32 %v794_v59  ;;  %v804_v61 = vsel %vm802_vm4, %v798_v60, 0 }
 0x43c   : > { %1795 = vmatpush3.bf16.msra.mxu0 %v804_v61 }
 0x43d   : > { %1806 = vmatprep.subr.bf16.mxu0 %v2203_v9 }
 0x43e   : > { %v906_v62 = vpop.xlane.xlu0 %905 }
 0x43f   : > { %v907_v63 = vsub.f32 %v898_v42, %v906_v62 }
 0x441   : > { %v908_v0 = vmul.f32 1.442695, %v907_v63 }
 0x443   : > { %2001 = vpow2.f32 %v908_v0 }
 0x448   : > { %v2000_v2 = vpop.eup %1999 }
 0x449   : > { %v796_v3 = vpack.c.bf16 %v2000_v2, %v2000_v2  ;;  %v846_v15 = vsel %vm743_vm3, %v2000_v2, 0.0 }
 0x44b   : > { %1797 = vmatmul.mubr.msk.bf16.vlgmr.msra.gmra.mxu0 %vm743_vm3, %v796_v3  ;;  %v1726_v3 = vld [vmem:[%s2807_s29] ss:$0 sm:$0xff] }
 0x44c   : > { %1808 = vmatprep.mubr.msk.bf16.mxu0 %vm2204_vm2, %v2203_v9 }
 0x44e   : > { %v1144_v4 = vpop.xlane.xlu0 %1143 }
 0x44f   : > { %v1145_v5 = vsub.f32 %v1136_v51, %v1144_v4 }
 0x450   : > { %v2002_v6 = vpop.eup %2001 }
 0x451   : > { %v1146_v7 = vmul.f32 1.442695, %v1145_v5  ;;  %v959_v8 = vsel %vm743_vm3, %v2002_v6, 0.0  ;;  %v910_v12 = vpack.c.bf16 %v2002_v6, %v2002_v6 }
 0x452   : > { %960 = vadd.xlane.f32.xlu0 %v959_v8  ;;  %v912_v10 = vpop.permute.xlu0 %911 }
 0x453   : > { %2003 = vpow2.f32 %v1146_v7  ;;  %v917_v11 = vsel %vm802_vm4, %v912_v10, 0 }
 0x454   : > { %1807 = vmatpush3.bf16.msra.mxu0 %v917_v11 }
 0x455   : > { %1818 = vmatprep.subr.bf16.mxu0 %v2203_v9 }
 0x457   : > { %1809 = vmatmul.mubr.msk.bf16.vlgmr.msra.gmra.mxu0 %vm743_vm3, %v910_v12 }
 0x458   : > { %1820 = vmatprep.mubr.msk.bf16.mxu0 %vm2204_vm2, %v2203_v9 }
 0x460   : > { %v2004_v13 = vpop.eup %2003 }
 0x461   : > { %v1197_v14 = vsel %vm743_vm3, %v2004_v13, 0.0  ;;  %v1148_v26 = vpack.c.bf16 %v2004_v13, %v2004_v13 }
 0x462   : > { %1198 = vadd.xlane.f32.xlu0 %v1197_v14 }
 0x466   : > { %847 = vadd.xlane.f32.xlu0 %v846_v15 }
 0x46b   : > { %v1025_v16 = vpop.xlane.xlu1 %1024 }
 0x46c   : > { %v1026_v17 = vsub.f32 %v1017_v47, %v1025_v16  ;;  %v1989_v47 = vld [vmem:[%s2482_s18 + $0x8] sm:$0xff]   ;;  %v1992_v16 = vld [vmem:[%s2499_s23] sm:$0xff]  }
 0x46d   : > { %1837 = vmatpush3.bf16.msra.mxu1 %v1989_v47 }
 0x46e   : > { %v1027_v18 = vmul.f32 1.442695, %v1026_v17  ;;  %1838 = vmatprep.subr.bf16.mxu1 %v2203_v9 }
 0x46f   : > { %v1031_v19 = vpop.permute.xlu1 %1030 }
 0x470   : > { %2005 = vpow2.f32 %v1027_v18  ;;  %v1036_v20 = vsel %vm802_vm4, %v1031_v19, 0 }
 0x471   : > { %1819 = vmatpush3.bf16.msra.mxu0 %v1036_v20  ;;  %1839 = vmatpush3.bf16.msra.mxu1 %v1990_v50 }
 0x472   : > { %1830 = vmatprep.subr.bf16.mxu0 %v2203_v9  ;;  %1852 = vmatprep.subr.bf16.mxu1 %v2203_v9 }
 0x473   : > { %v1150_v22 = vpop.permute.xlu1 %1149 }
 0x474   : > { %v1155_v25 = vsel %vm802_vm4, %v1150_v22, 0 }
 0x47d   : > { %v2006_v21 = vpop.eup %2005 }
 0x47e   : > { %v1078_v23 = vsel %vm743_vm3, %v2006_v21, 0.0  ;;  %v1029_v24 = vpack.c.bf16 %v2006_v21, %v2006_v21  ;;  %v1727_v21 = vld [vmem:[%s2808_s1] ss:$0 sm:$0xff] }
 0x47f   : > { %1079 = vadd.xlane.f32.xlu1 %v1078_v23  ;;  %v1728_v23 = vld [vmem:[%s622_s21] ss:$0 sm:$0xff] }
 0x480   : > { %1821 = vmatmul.mubr.msk.bf16.vlgmr.msra.gmra.mxu0 %vm743_vm3, %v1029_v24 }
 0x481   : > { %1831 = vmatpush3.bf16.msra.mxu0 %v1155_v25  ;;  %1832 = vmatprep.mubr.msk.bf16.mxu0 %vm2204_vm2, %v2203_v9 }
 0x482   : > { %1844 = vmatprep.subr.bf16.mxu0 %v2203_v9 }
 0x488   : > { %1833 = vmatmul.mubr.msk.bf16.vlgmr.msra.gmra.mxu0 %vm743_vm3, %v1148_v26 }
 0x489   : > { %1848 = vmatprep.mubr.msk.bf16.mxu0 %vm2204_vm2, %v2203_v9 }
 0x4db   : > { %v961_v27 = vpop.xlane.xlu0 %960 }
 0x4eb   : > { %v1199_v28 = vpop.xlane.xlu0 %1198 }
 0x4ef   : > { %v848_v29 = vpop.xlane.xlu0 %847 }
 0x4f0   : > { %2007 = vrcp.f32 %v848_v29  ;;  %v1995_v29 = vld [vmem:[%s2509_s16 + $0x8] sm:$0xff]  }
 0x4f1   : > { %2009 = vrcp.f32 %v961_v27  ;;  %v1993_v27 = vld [vmem:[%s2509_s16 + $0x18] sm:$0xff]  }
 0x4fd   : > { %v2008_v30 = vpop.eup %2007 }
 0x4fe   : > { %v2010_v37 = vpop.eup %2009 }
 0x508   : > { %v1080_v44 = vpop.xlane.xlu1 %1079 }
 0x509   : > { %2011 = vrcp.f32 %v1080_v44 }
 0x50a   : > { %2013 = vrcp.f32 %v1199_v28  ;;  %v1994_v28 = vld [vmem:[%s2509_s16 + $0x10] sm:$0xff]  }
 0x50b   : > { %v840_v31 = vpop.f32.mrf.mxu0 }
 0x50c   : > { %v850_v32 = vmul.f32 %v2008_v30, %v840_v31  ;;  %v1996_v30 = vld [vmem:[%s2509_s16] sm:$0xff]  }
 0x50d   : > { %v1798_v33 = vpop.f32.mrf.mxu0  ;;  %v1729_v31 = vld [vmem:[%s630_s22] ss:$0 sm:$0xff]  ;;  %s2812_s22 = sld [smem:[#allocation27_spill]] }
 0x50e   : > { %v851_v34 = vpack.c.bf16 %v850_v32, %v850_v32 }
 0x50f   : > { %v843_v35 = vpop.f32.mrf.mxu0 }
 0x510   : > { %853 = vst.msk [vmem:[#allocation2] sm:$0xf] %vm852_vm5, %v851_v34 }
 0x511   : > { %v1799_v36 = vpop.f32.mrf.mxu0 }
 0x513   : > { %s1472_s14 = scalar_lea.sflag [#allocation5], %s2812_s22 }
 0x516   : > { %v2012_v45 = vpop.eup %2011 }
 0x517   : > { %v953_v38 = vpop.f32.mrf.mxu0  ;;  %v2014_v54 = vpop.eup %2013 }
 0x518   : > { %v963_v39 = vmul.f32 %v2010_v37, %v953_v38 }
 0x519   : > { %v1810_v40 = vpop.f32.mrf.mxu0 }
 0x51a   : > { %v1747_v41 = vpack.c.bf16 %v963_v39, %v963_v39 }
 0x51b   : > { %v956_v42 = vpop.f32.mrf.mxu0 }
 0x51c   : > { %968 = vrot.lane.b32.xlu1 %v1747_v41, %s2216_s17  ;;  %s2815_s17 = sld [smem:[#allocation37_spill]] }
 0x51d   : > { %v1811_v43 = vpop.f32.mrf.mxu0 }
 0x540   : > { %v1072_v46 = vpop.f32.mrf.mxu0 }
 0x541   : > { %v1082_v48 = vmul.f32 %v2012_v45, %v1072_v46  ;;  %v1733_v46 = vld [vmem:[%s638_s26] ss:$0 sm:$0xff]  ;;  %s2075_s26 = scalar_lea.vmem %s2665_s12, 128 }
 0x542   : > { %v1822_v49 = vpop.f32.mrf.mxu0  ;;  %p2076_p1 = scmp.ne.s32.totalorder %s2665_s12, %s2075_s26 }
 0x543   : > { %v1748_v51 = vpack.c.bf16 %v1082_v48, %v1082_v48 }
 0x544   : > { %v1075_v52 = vpop.f32.mrf.mxu0  ;;  %p2077_p5 = pnand %p2076_p1, %p2816_p13 }
 0x545   : > { %1087 = vrot.lane.b32.xlu0 %v1748_v51, %s2217_s7  ;;  %s2663_s7 = scalar_lea.hbm %s2815_s17, %s1740_s15 }
 0x546   : > { %v1823_v53 = vpop.f32.mrf.mxu0  ;;  %p2078_p3 = pneg %p2077_p5 }
 0x548   : > { %v1191_v55 = vpop.f32.mrf.mxu0 }
 0x549   : > { %v1201_v56 = vmul.f32 %v2014_v54, %v1191_v55 }
 0x54a   : > { %v1834_v57 = vpop.f32.mrf.mxu0 }
 0x54b   : > { %v1749_v58 = vpack.c.bf16 %v1201_v56, %v1201_v56 }
 0x54c   : > { %v1194_v59 = vpop.f32.mrf.mxu0 }
 0x54d   : > { %1206 = vrot.lane.b32.xlu1 %v1749_v58, %s2218_s9  ;;  %s2219_s9 = smov [#allocation8]  }
 0x54e   : > { %v1835_v60 = vpop.f32.mrf.mxu0  ;;  %s2079_s18 = sshll.u32 %s2219_s9, 4  ;;  %s2080_s18 = int_to_ptr.vmem [resolvable:$false] %s2079_s18 }
 0x54f   : > { %s2081_s19 = scalar_lea.vmem %s2080_s18, 256  ;;  %p2082_p4 = scmp.lt.s32.totalorder %s2665_s12, %s2080_s18 }
 0x550   : > { %p2083_p9 = scmp.lt.s32.totalorder %s2081_s19, %s2075_s26 }
 0x552   : > { %p2084_p10 = por %p2083_p9, %p2082_p4 }
 0x554   : > { %p2085_p11 = pnand %p2084_p10, %p2078_p3 }
 0x58e   : > { %v969_v61 = vpop.permute.xlu1 %968 }
 0x58f   : > { %972 = vst.msk [vmem:[#allocation2] sm:$0xf] %vm971_vm6, %v969_v61 }
 0x5b7   : > { %v1088_v62 = vpop.permute.xlu0 %1087 }
 0x5b8   : > { %1091 = vst.msk [vmem:[#allocation2] sm:$0xf] %vm1090_vm7, %v1088_v62 }
 0x5bf   : > { %v1207_v63 = vpop.permute.xlu1 %1206 }
 0x5c0   : > { %1210 = vst.msk [vmem:[#allocation2] sm:$0xf] %vm1209_vm8, %v1207_v63 }
 0x5c7   : > { %v1211_v0 = vld [vmem:[#allocation2] sm:$0xf] }
 0x5c8   : > { %1841 = vmatmul.mubr.msk.bf16.vlgmr.msra.gmra.mxu1 %vm650_vm1, %v1211_v0 }
 0x5c9   : > { %1860 = vmatprep.mubr.msk.bf16.mxu1 %vm2204_vm2, %v2203_v9  ;;  %1853 = vmatpush3.bf16.msra.mxu1 %v1993_v27 }
 0x5ca   : > { %1854 = vmatprep.subr.bf16.mxu1 %v2203_v9 }
 0x5cd   : > { %1855 = vmatpush3.bf16.msra.mxu1 %v1994_v28 }
 0x5ce   : > { %1856 = vmatprep.subr.bf16.mxu1 %v2203_v9 }
 0x5d1   : > { %1857 = vmatpush3.bf16.msra.mxu1 %v1995_v29 }
 0x5d2   : > { %1858 = vmatprep.subr.bf16.mxu1 %v2203_v9 }
 0x5d5   : > { %1859 = vmatpush3.bf16.msra.mxu1 %v1996_v30 }
 0x688   : > { %v1265_v2 = vpop.f32.mrf.mxu1 }
 0x689   : > { %v1271_v4 = vadd.f32 %v1265_v2, %v2520_v1  ;;  %v1991_v1 = vld [vmem:[%s2499_s23 + $0x8] sm:$0xff]  }
 0x68a   : > { %v1842_v5 = vpop.f32.mrf.mxu1  ;;  %1845 = vmatpush3.bf16.msra.mxu0 %v1991_v1 }
 0x68b   : > { %v2620_v6 = vadd.f32 %v1726_v3, %v1271_v4  ;;  %1846 = vmatprep.subr.bf16.mxu0 %v2203_v9 }
 0x68c   : > { %v1268_v7 = vpop.f32.mrf.mxu1 }
 0x68d   : > { %v1282_v8 = vsel %vm650_vm1, %v2620_v6, 0.0 }
 0x68e   : > { %1283 = vadd.xlane.f32.xlu1 %v1282_v8  ;;  %v1843_v10 = vpop.f32.mrf.mxu1  ;;  %1847 = vmatpush3.bf16.msra.mxu0 %v1992_v16 }
 0x717   : > { %v1284_v11 = vpop.xlane.xlu1 %1283 }
 0x718   : > { %v1285_v12 = vmul.f32 0.03125, %v1284_v11 }
 0x71a   : > { %v1286_v13 = vsub.f32 %v2620_v6, %v1285_v12 }
 0x71c   : > { %v1287_v14 = vmul.f32 %v1286_v13, %v1286_v13 }
 0x71e   : > { %v1288_v15 = vsel %vm650_vm1, %v1287_v14, 0.0 }
 0x71f   : > { %1289 = vadd.xlane.f32.xlu0 %v1288_v15 }
 0x7a8   : > { %v1290_v17 = vpop.xlane.xlu0 %1289 }
 0x7a9   : > { %v1291_v18 = vmul.f32 0.03125, %v1290_v17 }
 0x7ab   : > { %v1292_v19 = vadd.f32 1e-05, %v1291_v18 }
 0x7ad   : > { %2015 = vrsqrt.f32 %v1292_v19 }
 0x7ba   : > { %v2016_v20 = vpop.eup %2015 }
 0x7bb   : > { %v1294_v22 = vmul.f32 %v2016_v20, %v1286_v13 }
 0x7bd   : > { %v1301_v24 = vmul.f32 %v1727_v21, %v1294_v22 }
 0x7bf   : > { %v1308_v25 = vadd.f32 %v1728_v23, %v1301_v24 }
 0x7c1   : > { %v1309_v26 = vpack.c.bf16 %v1308_v25, %v1308_v25 }
 0x7c3   : > { %1849 = vmatmul.mubr.msk.bf16.vlgmr.msra.gmra.mxu0 %vm650_vm1, %v1309_v26 }
 0x883   : > { %v1370_v32 = vpop.f32.mrf.mxu0 }
 0x884   : > { %v1371_v33 = vadd.f32 %v1729_v31, %v1370_v32 }
 0x885   : > { %v1850_v34 = vpop.f32.mrf.mxu0 }
 0x886   : > { %v1377_v35 = vmul.f32 0.044715, %v1371_v33  ;;  %v1376_v42 = vmul.f32 0.5, %v1371_v33 }
 0x887   : > { %v1373_v36 = vpop.f32.mrf.mxu0 }
 0x888   : > { %v1378_v37 = vmul.f32 %v1377_v35, %v1371_v33 }
 0x889   : > { %v1851_v38 = vpop.f32.mrf.mxu0 }
 0x88a   : > { %v1379_v39 = vmul.f32 %v1378_v37, %v1371_v33 }
 0x88c   : > { %v1380_v40 = vadd.f32 %v1379_v39, %v1371_v33 }
 0x88e   : > { %v1381_v41 = vmul.f32 0.7978846, %v1380_v40 }
 0x890   : > { %2017 = vtanh.f32 %v1381_v41 }
 0x89d   : > { %v2018_v9 = vpop.eup %2017 }
 0x89e   : > { %v1383_v43 = vadd.f32 1.0, %v2018_v9 }
 0x8a0   : > { %v1384_v44 = vmul.f32 %v1383_v43, %v1376_v42 }
 0x8a2   : > { %v1385_v45 = vpack.c.bf16 %v1384_v44, %v1384_v44 }
 0x8a4   : > { %1861 = vmatmul.mubr.msk.bf16.vlgmr.msra.gmra.mxu1 %vm1425_vm9, %v1385_v45 }
 0x964   : > { %v1463_v47 = vpop.f32.mrf.mxu1 }
 0x965   : > { %v1464_v48 = vadd.f32 %v1733_v46, %v1463_v47 }
 0x966   : > { %v1862_v49 = vpop.f32.mrf.mxu1 }
 0x967   : > { %v1469_v50 = vadd.f32 %v1464_v48, %v2620_v6 }
 0x968   : > { %v1466_v51 = vpop.f32.mrf.mxu1 }
 0x969   : > { %1470 = vst.msk [vmem:[%s2515_s25] sm:$0xff] %vm650_vm1, %v1469_v50 }
 0x96a   : > { %v1863_v52 = vpop.f32.mrf.mxu1 }
 0x96b   : > { %2088 = shalt.err (!%p2085_p11)
}
 0x96c   : > { %s2089_s25 = scalar_lea.hbm %s2663_s7, 128  ;;  %s2093_s0 = scalar_lea.hbm %s2815_s17, 256 }
 0x96d   : > { %p2090_p0 = scmp.ne.s32.totalorder %s2663_s7, %s2089_s25  ;;  %p2094_p7 = scmp.lt.s32.totalorder %s2663_s7, %s2815_s17 }
 0x96e   : > { %p2095_p8 = scmp.lt.s32.totalorder %s2093_s0, %s2089_s25 }
 0x96f   : > { %p2091_p12 = pnand %p2090_p0, %p2816_p13 }
 0x970   : > { %p2096_p6 = por %p2095_p8, %p2094_p7 }
 0x971   : > { %p2092_p2 = pneg %p2091_p12 }
 0x973   : > { %p2097_p1 = pnand %p2096_p6, %p2092_p2 }
 0x975   : > { %2100 = shalt.err (!%p2097_p1)
}
 0x976   : > { %1868 = dma.vmem_to_hbm [thread:$0]  (%p2816_p13), %s2665_s12, 128, %s2663_s7, %s1472_s14  }
 0x977 PF: > { %s2817_s4 = sld [smem:[#allocation20_spill]] }
 0x978   : > { %s2818_s23 = sld [smem:[#allocation14_spill]] }
 0x979   : > { %s2819_s21 = sld [smem:[#allocation22_spill]] }
 0x97d   : > { %p1882_p5 = scmp.ge.s32.totalorder %s2817_s4, 2 }
 0x97e   : > { %s1497_s27 = sand.u32 1, %s2818_s23  }
 0x97f   : > { %p2820_p3 = scmp.ne.s32.totalorder %s2819_s21, 0  ;;  %s1498_s13 = scalar_lea.sflag [#allocation5], %s1497_s27 }
 0x981   : > { %p1878_p4 = pnand %p1882_p5, %p2820_p3 }
 0x983   : > { %p1879_p9 = pneg %p1878_p4 }
 0x985   : > { %2154 = dma.done.wait (%p1879_p9), %s1498_s13, 128  }
 0x986   : > { %2156 = vsyncadd (%p1879_p9), %s1498_s13, 4294967168  ;;  %s31_s13 = sadd.s32 1, %s2817_s4   ;;  %s2821_s21 = sld [smem:[#allocation12_spill]] }
 0x987   : > { %p28_p10 = scmp.ge.s32.totalorder %s31_s13, 6   ;;  %s2822_s22 = sld [smem:[#allocation13_spill]] }
 0x988   : > { %s2823_s23 = sld [smem:[#allocation25_spill]] }
 0x989   : > { %s2824_s24 = sld [smem:[#allocation15_spill]] }
 0x98a   : > { %s2825_s25 = sld [smem:[#allocation16_spill]] }
 0x98b   : > { %s2826_s26 = sld [smem:[#allocation26_spill]]  ;;  %30 = sbr.rel (!%p28_p10) target bundleno = 22 (0x16), region = 160 }
 0x98c   : > { %s2827_s27 = sld [smem:[#allocation18_spill]] }
 0x98d   : > { %s2828_s28 = sld [smem:[#allocation19_spill]] }
 0x98e   : > { %s2829_s29 = sld [smem:[#allocation23_spill]] }
 0x98f   : > { %s2830_s30 = sld [smem:[#allocation24_spill]] }
 0x990   :  { %1503 = vsyncpa [#allocation4], 1 }
 0x991   :  { %1505 = vsyncpa [#allocation4 + $0x1], 1 }
 0x992   :  { %1506 = vsyncpa [#allocation7], 1 }
 0x993   :  { %1508 = vsyncpa [#allocation7 + $0x1], 1 }
 0x994   :  { %1509 = vsyncpa [#allocation5], 1 }
 0x995   :  { %1511 = vsyncpa [#allocation5 + $0x1], 1 }

</bundles_post_ra>
